<compile_context>
chip_gen: v5e
topology: v5e:2x2
jax: 0.10.0
libtpu: 0.0.40
codegen_flags: <defaults>
</compile_context>

<pallas_src>
import functools

import jax
import jax.numpy as jnp
from jax.experimental import pallas as pl
from jax.experimental.pallas import tpu as pltpu


def _mha_kernel(q_ref, k_ref, v_ref, mask_ref,
                wq_ref, wk_ref, wv_ref, wo_ref,
                out_ref, attn_ref,
                *, num_heads, dk_head, dv_head, query_scale):
    bf16 = jnp.bfloat16
    f32 = jnp.float32

    bt, tq, din = q_ref.shape
    _, lk, _ = k_ref.shape
    dk = wq_ref.shape[1]
    dv = wv_ref.shape[1]
    do = wo_ref.shape[1]

    # ---- Q/K/V projections: bf16 MXU operands, f32 accumulation.
    # Flatten (Bt, L, Din) -> (Bt*L, Din) so batch rides the sublane axis of a
    # single matmul instead of Bt tiny ones.
    q2d = q_ref[...].reshape(bt * tq, din).astype(bf16)
    k2d = k_ref[...].reshape(bt * lk, din).astype(bf16)
    v2d = v_ref[...].reshape(bt * lk, din).astype(bf16)

    Q = jnp.dot(q2d, wq_ref[...].astype(bf16), preferred_element_type=f32)
    K = jnp.dot(k2d, wk_ref[...].astype(bf16), preferred_element_type=f32)
    V = jnp.dot(v2d, wv_ref[...].astype(bf16), preferred_element_type=f32)

    # Query scaling hoisted out of the head loop (one f32 VPU pass).
    Q = (Q * query_scale).reshape(bt, tq, dk)
    K = K.reshape(bt, lk, dk)
    V = V.reshape(bt, lk, dv)

    # Additive mask bias computed once; per head it costs a single vadd.
    bias = jnp.where(mask_ref[...] > 0.5, jnp.float32(-1e18), jnp.float32(0.0))

    logits_sum = jnp.zeros((bt, tq, lk), f32)
    out_acc = jnp.zeros((bt * tq, do), f32)

    # num_heads is small & static -> fully unrolled Python loop.
    # TODO(synk): switch to lax.fori_loop(..., unroll=small) if num_heads >> 8.
    for h in range(num_heads):
        qh = Q[:, :, h * dk_head:(h + 1) * dk_head].astype(bf16)
        kh = K[:, :, h * dk_head:(h + 1) * dk_head].astype(bf16)
        vh = V[:, :, h * dv_head:(h + 1) * dv_head].astype(bf16)

        logits = jnp.einsum('bqd,bkd->bqk', qh, kh,
                            preferred_element_type=f32)          # [Bt, tq, Lk]
        logits = logits + bias
        logits_sum = logits_sum + logits

        # Softmax in f32; divide replaced by EUP reciprocal.
        m = jnp.max(logits, axis=-1, keepdims=True)
        e = jnp.exp(logits - m)
        s = jnp.sum(e, axis=-1, keepdims=True)
        w = e * pl.reciprocal(s, approx=True)

        ctx = jnp.einsum('bqk,bkd->bqd', w.astype(bf16), vh,
                         preferred_element_type=f32)              # [Bt, tq, dvh]

        # Accumulate the output projection per head instead of concatenating
        # head contexts along the lane dim.
        wo_h = wo_ref[h * dv_head:(h + 1) * dv_head, :].astype(bf16)
        out_acc = out_acc + jnp.dot(
            ctx.reshape(bt * tq, dv_head).astype(bf16), wo_h,
            preferred_element_type=f32)

    out_ref[...] = out_acc.reshape(bt, tq, do)

    # Head-summed logits -> softmax (the module's `attention_weights` output).
    aw = logits_sum * (1.0 / num_heads)
    m = jnp.max(aw, axis=-1, keepdims=True)
    e = jnp.exp(aw - m)
    s = jnp.sum(e, axis=-1, keepdims=True)
    attn_ref[...] = e * pl.reciprocal(s, approx=True)


def _pick_block(n, target, align):
    """Largest divisor of n that is <= target and (multiple of align or == n)."""
    if n <= target:
        return n
    for b in range(target, 0, -1):
        if n % b == 0 and b % align == 0:
            return b
    return n


def multi_head_attention(queries, keys, values, mask,
                         wq, wk, wv, wo, *, num_heads):
    """
    queries: [B, Lq, Din], keys/values: [B, Lk, Din]
    mask:    [B, Lq, Lk] float32 (1.0 where attention is masked out)
    wq, wk:  [Din, Dk]   (pre-transposed nn.Linear weights)
    wv:      [Din, Dv]
    wo:      [Dv, Do]
    Returns: (outputs [B, Lq, Do], attention_weights [B, Lq, Lk])
    """
    B, Lq, Din = queries.shape
    _, Lk, _ = keys.shape
    Dk = wq.shape[1]
    Dv = wv.shape[1]
    Do = wo.shape[1]
    dk_head = Dk // num_heads
    dv_head = Dv // num_heads
    query_scale = float(dk_head) ** (-0.5)

    Bt = _pick_block(B, 8, 1)       # batch elements per grid step
    Tq = _pick_block(Lq, 256, 8)    # query rows per grid step (VMEM-safe on v7x)

    kernel = functools.partial(
        _mha_kernel, num_heads=num_heads, dk_head=dk_head, dv_head=dv_head,
        query_scale=query_scale)

    grid_spec = pltpu.PrefetchScalarGridSpec(
        num_scalar_prefetch=0,
        grid=(B // Bt, Lq // Tq),
        in_specs=[
            pl.BlockSpec((Bt, Tq, Din), lambda b, q: (b, q, 0)),   # queries
            pl.BlockSpec((Bt, Lk, Din), lambda b, q: (b, 0, 0)),   # keys
            pl.BlockSpec((Bt, Lk, Din), lambda b, q: (b, 0, 0)),   # values
            pl.BlockSpec((Bt, Tq, Lk), lambda b, q: (b, q, 0)),    # mask
            # TODO(synk): pipeline_mode=pl.Buffered(1) on these grid-invariant
            # weight specs would halve resident weight VMEM; kept at default
            # buffering for lowering portability.
            pl.BlockSpec((Din, Dk), lambda b, q: (0, 0)),          # Wq
            pl.BlockSpec((Din, Dk), lambda b, q: (0, 0)),          # Wk
            pl.BlockSpec((Din, Dv), lambda b, q: (0, 0)),          # Wv
            pl.BlockSpec((Dv, Do), lambda b, q: (0, 0)),           # Wo
        ],
        out_specs=[
            pl.BlockSpec((Bt, Tq, Do), lambda b, q: (b, q, 0)),    # outputs
            pl.BlockSpec((Bt, Tq, Lk), lambda b, q: (b, q, 0)),    # attn weights
        ],
    )

    return pl.pallas_call(
        kernel,
        grid_spec=grid_spec,
        out_shape=(
            jax.ShapeDtypeStruct((B, Lq, Do), jnp.float32),
            jax.ShapeDtypeStruct((B, Lq, Lk), jnp.float32),
        ),
        compiler_params=pltpu.CompilerParams(
            dimension_semantics=("parallel", "parallel"),
            vmem_limit_bytes=64 * 1024 * 1024),
    )(queries, keys, values, mask, wq, wk, wv, wo)


def _reference(queries, keys, values, mask, wq, wk, wv, wo, *, num_heads):
    """Pure-JAX reimplementation of the PyTorch forward, mirroring the kernel's
    bf16-at-MXU / f32-accumulate numerics so the comparison is tight."""
    bf = jnp.bfloat16
    f32 = jnp.float32
    B, Lq, _ = queries.shape
    _, Lk, _ = keys.shape
    Dk = wq.shape[1]
    Dv = wv.shape[1]
    dkh = Dk // num_heads
    dvh = Dv // num_heads
    scale = float(dkh) ** (-0.5)

    Q = jnp.dot(queries.astype(bf), wq.astype(bf), preferred_element_type=f32) * scale
    K = jnp.dot(keys.astype(bf), wk.astype(bf), preferred_element_type=f32)
    V = jnp.dot(values.astype(bf), wv.astype(bf), preferred_element_type=f32)

    def split(x, d):
        b, l, _ = x.shape
        return x.reshape(b, l, num_heads, d).transpose(0, 2, 1, 3)

    Qh = split(Q, dkh).astype(bf)
    Kh = split(K, dkh).astype(bf)
    Vh = split(V, dvh).astype(bf)

    logits = jnp.einsum('bhqd,bhkd->bhqk', Qh, Kh, preferred_element_type=f32)
    logits = jnp.where(mask[:, None, :, :] > 0.5, -1e18, logits)
    attn_w = jax.nn.softmax(logits.sum(axis=1) / num_heads, axis=-1)
    w = jax.nn.softmax(logits, axis=-1)
    ctx = jnp.einsum('bhqk,bhkd->bhqd', w.astype(bf), Vh, preferred_element_type=f32)
    ctx = ctx.transpose(0, 2, 1, 3).reshape(B, Lq, Dv)
    out = jnp.dot(ctx.astype(bf), wo.astype(bf), preferred_element_type=f32)
    return out, attn_w


if __name__ == "__main__":
    # Small shapes consistent with the module.
    B, Lq, Lk = 2, 8, 8
    input_depth = 32
    total_key_depth = 32
    total_value_depth = 32
    output_depth = 32
    num_heads = 4

    key = jax.random.PRNGKey(0)
    k_q, k_k, k_v, k_wq, k_wk, k_wv, k_wo = jax.random.split(key, 7)

    queries = jax.random.normal(k_q, (B, Lq, input_depth), jnp.float32)
    keys = jax.random.normal(k_k, (B, Lk, input_depth), jnp.float32)
    values = jax.random.normal(k_v, (B, Lk, input_depth), jnp.float32)

    # Deterministic parameter init (nn.Linear weights, pre-transposed to [in, out]).
    def init_w(k, fan_in, fan_out):
        bound = 1.0 / (fan_in ** 0.5)
        return jax.random.uniform(k, (fan_in, fan_out), jnp.float32, -bound, bound)

    wq = init_w(k_wq, input_depth, total_key_depth)
    wk = init_w(k_wk, input_depth, total_key_depth)
    wv = init_w(k_wv, input_depth, total_value_depth)
    wo = init_w(k_wo, total_value_depth, output_depth)

    # Causal mask: 1.0 where the key position is in the future.
    causal = (jnp.arange(Lk)[None, :] > jnp.arange(Lq)[:, None]).astype(jnp.float32)
    mask = jnp.broadcast_to(causal, (B, Lq, Lk))

    outputs, attn = multi_head_attention(
        queries, keys, values, mask, wq, wk, wv, wo, num_heads=num_heads)
    jax.block_until_ready((outputs, attn))

    ref_out, ref_attn = _reference(
        queries, keys, values, mask, wq, wk, wv, wo, num_heads=num_heads)

    # Tolerance covers the approx EUP reciprocal + accumulation-order deltas;
    # the bf16 MXU numerics are mirrored by the reference.
    assert jnp.allclose(outputs, ref_out, atol=2e-2, rtol=2e-2)
    assert jnp.allclose(attn, ref_attn, atol=2e-2, rtol=2e-2)
    print("KERNEL_OK")
</pallas_src>

<mosaic_0001>
module attributes {stable_mosaic.version = 11 : i64} {
  func.func @_mha_kernel(%arg0: i32, %arg1: i32, %arg2: memref<2x8x32xf32, #tpu.memory_space<vmem>>, %arg3: memref<2x8x32xf32, #tpu.memory_space<vmem>>, %arg4: memref<2x8x32xf32, #tpu.memory_space<vmem>>, %arg5: memref<2x8x8xf32, #tpu.memory_space<vmem>>, %arg6: memref<32x32xf32, #tpu.memory_space<vmem>>, %arg7: memref<32x32xf32, #tpu.memory_space<vmem>>, %arg8: memref<32x32xf32, #tpu.memory_space<vmem>>, %arg9: memref<32x32xf32, #tpu.memory_space<vmem>>, %arg10: memref<2x8x32xf32, #tpu.memory_space<vmem>>, %arg11: memref<2x8x8xf32, #tpu.memory_space<vmem>>) attributes {dimension_semantics = [#tpu.dimension_semantics<parallel>, #tpu.dimension_semantics<parallel>], iteration_bounds = array<i64: 1, 1>, scalar_prefetch = 0 : i64, scratch_operands = 0 : i64, tpu.core_type = #tpu.core_type<tc>, window_params = [{transform_indices = @transform_0, window_bounds = array<i64: 2, 8, 32>}, {transform_indices = @transform_1, window_bounds = array<i64: 2, 8, 32>}, {transform_indices = @transform_2, window_bounds = array<i64: 2, 8, 32>}, {transform_indices = @transform_3, window_bounds = array<i64: 2, 8, 8>}, {pipeline_mode = #tpu.pipeline_mode<synchronous>, transform_indices = @transform_4, window_bounds = array<i64: 32, 32>}, {pipeline_mode = #tpu.pipeline_mode<synchronous>, transform_indices = @transform_5, window_bounds = array<i64: 32, 32>}, {pipeline_mode = #tpu.pipeline_mode<synchronous>, transform_indices = @transform_6, window_bounds = array<i64: 32, 32>}, {pipeline_mode = #tpu.pipeline_mode<synchronous>, transform_indices = @transform_7, window_bounds = array<i64: 32, 32>}, {transform_indices = @transform_8, window_bounds = array<i64: 2, 8, 32>}, {transform_indices = @transform_9, window_bounds = array<i64: 2, 8, 8>}]} {
    %c0 = arith.constant 0 : index
    %c0_0 = arith.constant 0 : index
    %c0_1 = arith.constant 0 : index
    %0 = vector.load %arg2[%c0, %c0_0, %c0_1] : memref<2x8x32xf32, #tpu.memory_space<vmem>>, vector<2x8x32xf32>
    %1 = vector.shape_cast %0 : vector<2x8x32xf32> to vector<16x32xf32>
    %2 = arith.truncf %1 : vector<16x32xf32> to vector<16x32xbf16>
    %c0_2 = arith.constant 0 : index
    %c0_3 = arith.constant 0 : index
    %c0_4 = arith.constant 0 : index
    %3 = vector.load %arg3[%c0_2, %c0_3, %c0_4] : memref<2x8x32xf32, #tpu.memory_space<vmem>>, vector<2x8x32xf32>
    %4 = vector.shape_cast %3 : vector<2x8x32xf32> to vector<16x32xf32>
    %5 = arith.truncf %4 : vector<16x32xf32> to vector<16x32xbf16>
    %c0_5 = arith.constant 0 : index
    %c0_6 = arith.constant 0 : index
    %c0_7 = arith.constant 0 : index
    %6 = vector.load %arg4[%c0_5, %c0_6, %c0_7] : memref<2x8x32xf32, #tpu.memory_space<vmem>>, vector<2x8x32xf32>
    %7 = vector.shape_cast %6 : vector<2x8x32xf32> to vector<16x32xf32>
    %8 = arith.truncf %7 : vector<16x32xf32> to vector<16x32xbf16>
    %c0_8 = arith.constant 0 : index
    %c0_9 = arith.constant 0 : index
    %9 = vector.load %arg6[%c0_8, %c0_9] : memref<32x32xf32, #tpu.memory_space<vmem>>, vector<32x32xf32>
    %10 = arith.truncf %9 : vector<32x32xf32> to vector<32x32xbf16>
    %cst = arith.constant dense<0.000000e+00> : vector<16x32xf32>
    %11 = tpu.matmul %2, %10, %cst {dimension_numbers = #tpu.dot_dimension_numbers<[1], [0], [0], [1], [0, 0, 1, 1], [], []>} : vector<16x32xbf16>, vector<32x32xbf16>, vector<16x32xf32> -> vector<16x32xf32>
    %c0_10 = arith.constant 0 : index
    %c0_11 = arith.constant 0 : index
    %12 = vector.load %arg7[%c0_10, %c0_11] : memref<32x32xf32, #tpu.memory_space<vmem>>, vector<32x32xf32>
    %13 = arith.truncf %12 : vector<32x32xf32> to vector<32x32xbf16>
    %cst_12 = arith.constant dense<0.000000e+00> : vector<16x32xf32>
    %14 = tpu.matmul %5, %13, %cst_12 {dimension_numbers = #tpu.dot_dimension_numbers<[1], [0], [0], [1], [0, 0, 1, 1], [], []>} : vector<16x32xbf16>, vector<32x32xbf16>, vector<16x32xf32> -> vector<16x32xf32>
    %c0_13 = arith.constant 0 : index
    %c0_14 = arith.constant 0 : index
    %15 = vector.load %arg8[%c0_13, %c0_14] : memref<32x32xf32, #tpu.memory_space<vmem>>, vector<32x32xf32>
    %16 = arith.truncf %15 : vector<32x32xf32> to vector<32x32xbf16>
    %cst_15 = arith.constant dense<0.000000e+00> : vector<16x32xf32>
    %17 = tpu.matmul %8, %16, %cst_15 {dimension_numbers = #tpu.dot_dimension_numbers<[1], [0], [0], [1], [0, 0, 1, 1], [], []>} : vector<16x32xbf16>, vector<32x32xbf16>, vector<16x32xf32> -> vector<16x32xf32>
    %cst_16 = arith.constant 0.353553385 : f32
    %18 = vector.broadcast %cst_16 : f32 to vector<16x32xf32>
    %19 = arith.mulf %11, %18 : vector<16x32xf32>
    %20 = vector.shape_cast %19 : vector<16x32xf32> to vector<2x8x32xf32>
    %21 = vector.shape_cast %14 : vector<16x32xf32> to vector<2x8x32xf32>
    %22 = vector.shape_cast %17 : vector<16x32xf32> to vector<2x8x32xf32>
    %c0_17 = arith.constant 0 : index
    %c0_18 = arith.constant 0 : index
    %c0_19 = arith.constant 0 : index
    %23 = vector.load %arg5[%c0_17, %c0_18, %c0_19] : memref<2x8x8xf32, #tpu.memory_space<vmem>>, vector<2x8x8xf32>
    %cst_20 = arith.constant 5.000000e-01 : f32
    %24 = vector.broadcast %cst_20 : f32 to vector<2x8x8xf32>
    %25 = arith.cmpf ogt, %23, %24 : vector<2x8x8xf32>
    %cst_21 = arith.constant -9.99999984E+17 : f32
    %cst_22 = arith.constant 0.000000e+00 : f32
    %26 = vector.broadcast %cst_21 : f32 to vector<2x8x8xf32>
    %27 = vector.broadcast %cst_22 : f32 to vector<2x8x8xf32>
    %28 = arith.select %25, %26, %27 : vector<2x8x8xi1>, vector<2x8x8xf32>
    %cst_23 = arith.constant 0.000000e+00 : f32
    %29 = vector.broadcast %cst_23 : f32 to vector<2x8x8xf32>
    %cst_24 = arith.constant 0.000000e+00 : f32
    %30 = vector.broadcast %cst_24 : f32 to vector<16x32xf32>
    %31 = vector.extract_strided_slice %20 {offsets = [0, 0, 0], sizes = [2, 8, 8], strides = [1, 1, 1]} : vector<2x8x32xf32> to vector<2x8x8xf32>
    %32 = arith.truncf %31 : vector<2x8x8xf32> to vector<2x8x8xbf16>
    %33 = vector.extract_strided_slice %21 {offsets = [0, 0, 0], sizes = [2, 8, 8], strides = [1, 1, 1]} : vector<2x8x32xf32> to vector<2x8x8xf32>
    %34 = arith.truncf %33 : vector<2x8x8xf32> to vector<2x8x8xbf16>
    %35 = vector.extract_strided_slice %22 {offsets = [0, 0, 0], sizes = [2, 8, 8], strides = [1, 1, 1]} : vector<2x8x32xf32> to vector<2x8x8xf32>
    %36 = arith.truncf %35 : vector<2x8x8xf32> to vector<2x8x8xbf16>
    "tpu.trace_start"() <{level = 10 : i32, message = "bqd,bkd->bqk"}> : () -> ()
    %cst_25 = arith.constant dense<0.000000e+00> : vector<2x8x8xf32>
    %37 = tpu.matmul %32, %34, %cst_25 {dimension_numbers = #tpu.dot_dimension_numbers<[2], [2], [1], [1], [0, 0, 0, 1, 1, 1], [0], [0]>} : vector<2x8x8xbf16>, vector<2x8x8xbf16>, vector<2x8x8xf32> -> vector<2x8x8xf32>
    "tpu.trace_stop"() : () -> ()
    %38 = arith.addf %37, %28 : vector<2x8x8xf32>
    %39 = arith.addf %29, %38 : vector<2x8x8xf32>
    %cst_26 = arith.constant dense<0xFF800000> : vector<2x8xf32>
    %40 = vector.multi_reduction <maximumf>, %38, %cst_26 [2] : vector<2x8x8xf32> to vector<2x8xf32>
    %41 = vector.shape_cast %40 : vector<2x8xf32> to vector<2x8x1xf32>
    %42 = vector.broadcast %41 : vector<2x8x1xf32> to vector<2x8x8xf32>
    %43 = arith.subf %38, %42 : vector<2x8x8xf32>
    %44 = math.exp %43 : vector<2x8x8xf32>
    %cst_27 = arith.constant dense<0.000000e+00> : vector<2x8xf32>
    %45 = vector.multi_reduction <add>, %44, %cst_27 [2] : vector<2x8x8xf32> to vector<2x8xf32>
    %46 = vector.shape_cast %45 : vector<2x8xf32> to vector<2x8x1xf32>
    %47 = tpu.reciprocal %46 {approx = true} : vector<2x8x1xf32> -> vector<2x8x1xf32>
    %48 = vector.broadcast %47 : vector<2x8x1xf32> to vector<2x8x8xf32>
    %49 = arith.mulf %44, %48 : vector<2x8x8xf32>
    %50 = arith.truncf %49 : vector<2x8x8xf32> to vector<2x8x8xbf16>
    "tpu.trace_start"() <{level = 10 : i32, message = "bqk,bkd->bqd"}> : () -> ()
    %cst_28 = arith.constant dense<0.000000e+00> : vector<2x8x8xf32>
    %51 = tpu.matmul %50, %36, %cst_28 {dimension_numbers = #tpu.dot_dimension_numbers<[2], [1], [1], [2], [0, 0, 0, 1, 1, 2], [0], [0]>} : vector<2x8x8xbf16>, vector<2x8x8xbf16>, vector<2x8x8xf32> -> vector<2x8x8xf32>
    "tpu.trace_stop"() : () -> ()
    %c0_29 = arith.constant 0 : index
    %c0_30 = arith.constant 0 : index
    %52 = vector.load %arg9[%c0_29, %c0_30] : memref<32x32xf32, #tpu.memory_space<vmem>>, vector<8x32xf32>
    %53 = arith.truncf %52 : vector<8x32xf32> to vector<8x32xbf16>
    %54 = vector.shape_cast %51 : vector<2x8x8xf32> to vector<16x8xf32>
    %55 = arith.truncf %54 : vector<16x8xf32> to vector<16x8xbf16>
    %cst_31 = arith.constant dense<0.000000e+00> : vector<16x32xf32>
    %56 = tpu.matmul %55, %53, %cst_31 {dimension_numbers = #tpu.dot_dimension_numbers<[1], [0], [0], [1], [0, 0, 1, 1], [], []>} : vector<16x8xbf16>, vector<8x32xbf16>, vector<16x32xf32> -> vector<16x32xf32>
    %57 = arith.addf %30, %56 : vector<16x32xf32>
    %58 = vector.extract_strided_slice %20 {offsets = [0, 0, 8], sizes = [2, 8, 8], strides = [1, 1, 1]} : vector<2x8x32xf32> to vector<2x8x8xf32>
    %59 = arith.truncf %58 : vector<2x8x8xf32> to vector<2x8x8xbf16>
    %60 = vector.extract_strided_slice %21 {offsets = [0, 0, 8], sizes = [2, 8, 8], strides = [1, 1, 1]} : vector<2x8x32xf32> to vector<2x8x8xf32>
    %61 = arith.truncf %60 : vector<2x8x8xf32> to vector<2x8x8xbf16>
    %62 = vector.extract_strided_slice %22 {offsets = [0, 0, 8], sizes = [2, 8, 8], strides = [1, 1, 1]} : vector<2x8x32xf32> to vector<2x8x8xf32>
    %63 = arith.truncf %62 : vector<2x8x8xf32> to vector<2x8x8xbf16>
    "tpu.trace_start"() <{level = 10 : i32, message = "bqd,bkd->bqk"}> : () -> ()
    %cst_32 = arith.constant dense<0.000000e+00> : vector<2x8x8xf32>
    %64 = tpu.matmul %59, %61, %cst_32 {dimension_numbers = #tpu.dot_dimension_numbers<[2], [2], [1], [1], [0, 0, 0, 1, 1, 1], [0], [0]>} : vector<2x8x8xbf16>, vector<2x8x8xbf16>, vector<2x8x8xf32> -> vector<2x8x8xf32>
    "tpu.trace_stop"() : () -> ()
    %65 = arith.addf %64, %28 : vector<2x8x8xf32>
    %66 = arith.addf %39, %65 : vector<2x8x8xf32>
    %cst_33 = arith.constant dense<0xFF800000> : vector<2x8xf32>
    %67 = vector.multi_reduction <maximumf>, %65, %cst_33 [2] : vector<2x8x8xf32> to vector<2x8xf32>
    %68 = vector.shape_cast %67 : vector<2x8xf32> to vector<2x8x1xf32>
    %69 = vector.broadcast %68 : vector<2x8x1xf32> to vector<2x8x8xf32>
    %70 = arith.subf %65, %69 : vector<2x8x8xf32>
    %71 = math.exp %70 : vector<2x8x8xf32>
    %cst_34 = arith.constant dense<0.000000e+00> : vector<2x8xf32>
    %72 = vector.multi_reduction <add>, %71, %cst_34 [2] : vector<2x8x8xf32> to vector<2x8xf32>
    %73 = vector.shape_cast %72 : vector<2x8xf32> to vector<2x8x1xf32>
    %74 = tpu.reciprocal %73 {approx = true} : vector<2x8x1xf32> -> vector<2x8x1xf32>
    %75 = vector.broadcast %74 : vector<2x8x1xf32> to vector<2x8x8xf32>
    %76 = arith.mulf %71, %75 : vector<2x8x8xf32>
    %77 = arith.truncf %76 : vector<2x8x8xf32> to vector<2x8x8xbf16>
    "tpu.trace_start"() <{level = 10 : i32, message = "bqk,bkd->bqd"}> : () -> ()
    %cst_35 = arith.constant dense<0.000000e+00> : vector<2x8x8xf32>
    %78 = tpu.matmul %77, %63, %cst_35 {dimension_numbers = #tpu.dot_dimension_numbers<[2], [1], [1], [2], [0, 0, 0, 1, 1, 2], [0], [0]>} : vector<2x8x8xbf16>, vector<2x8x8xbf16>, vector<2x8x8xf32> -> vector<2x8x8xf32>
    "tpu.trace_stop"() : () -> ()
    %c8 = arith.constant 8 : index
    %c0_36 = arith.constant 0 : index
    %79 = vector.load %arg9[%c8, %c0_36] : memref<32x32xf32, #tpu.memory_space<vmem>>, vector<8x32xf32>
    %80 = arith.truncf %79 : vector<8x32xf32> to vector<8x32xbf16>
    %81 = vector.shape_cast %78 : vector<2x8x8xf32> to vector<16x8xf32>
    %82 = arith.truncf %81 : vector<16x8xf32> to vector<16x8xbf16>
    %cst_37 = arith.constant dense<0.000000e+00> : vector<16x32xf32>
    %83 = tpu.matmul %82, %80, %cst_37 {dimension_numbers = #tpu.dot_dimension_numbers<[1], [0], [0], [1], [0, 0, 1, 1], [], []>} : vector<16x8xbf16>, vector<8x32xbf16>, vector<16x32xf32> -> vector<16x32xf32>
    %84 = arith.addf %57, %83 : vector<16x32xf32>
    %85 = vector.extract_strided_slice %20 {offsets = [0, 0, 16], sizes = [2, 8, 8], strides = [1, 1, 1]} : vector<2x8x32xf32> to vector<2x8x8xf32>
    %86 = arith.truncf %85 : vector<2x8x8xf32> to vector<2x8x8xbf16>
    %87 = vector.extract_strided_slice %21 {offsets = [0, 0, 16], sizes = [2, 8, 8], strides = [1, 1, 1]} : vector<2x8x32xf32> to vector<2x8x8xf32>
    %88 = arith.truncf %87 : vector<2x8x8xf32> to vector<2x8x8xbf16>
    %89 = vector.extract_strided_slice %22 {offsets = [0, 0, 16], sizes = [2, 8, 8], strides = [1, 1, 1]} : vector<2x8x32xf32> to vector<2x8x8xf32>
    %90 = arith.truncf %89 : vector<2x8x8xf32> to vector<2x8x8xbf16>
    "tpu.trace_start"() <{level = 10 : i32, message = "bqd,bkd->bqk"}> : () -> ()
    %cst_38 = arith.constant dense<0.000000e+00> : vector<2x8x8xf32>
    %91 = tpu.matmul %86, %88, %cst_38 {dimension_numbers = #tpu.dot_dimension_numbers<[2], [2], [1], [1], [0, 0, 0, 1, 1, 1], [0], [0]>} : vector<2x8x8xbf16>, vector<2x8x8xbf16>, vector<2x8x8xf32> -> vector<2x8x8xf32>
    "tpu.trace_stop"() : () -> ()
    %92 = arith.addf %91, %28 : vector<2x8x8xf32>
    %93 = arith.addf %66, %92 : vector<2x8x8xf32>
    %cst_39 = arith.constant dense<0xFF800000> : vector<2x8xf32>
    %94 = vector.multi_reduction <maximumf>, %92, %cst_39 [2] : vector<2x8x8xf32> to vector<2x8xf32>
    %95 = vector.shape_cast %94 : vector<2x8xf32> to vector<2x8x1xf32>
    %96 = vector.broadcast %95 : vector<2x8x1xf32> to vector<2x8x8xf32>
    %97 = arith.subf %92, %96 : vector<2x8x8xf32>
    %98 = math.exp %97 : vector<2x8x8xf32>
    %cst_40 = arith.constant dense<0.000000e+00> : vector<2x8xf32>
    %99 = vector.multi_reduction <add>, %98, %cst_40 [2] : vector<2x8x8xf32> to vector<2x8xf32>
    %100 = vector.shape_cast %99 : vector<2x8xf32> to vector<2x8x1xf32>
    %101 = tpu.reciprocal %100 {approx = true} : vector<2x8x1xf32> -> vector<2x8x1xf32>
    %102 = vector.broadcast %101 : vector<2x8x1xf32> to vector<2x8x8xf32>
    %103 = arith.mulf %98, %102 : vector<2x8x8xf32>
    %104 = arith.truncf %103 : vector<2x8x8xf32> to vector<2x8x8xbf16>
    "tpu.trace_start"() <{level = 10 : i32, message = "bqk,bkd->bqd"}> : () -> ()
    %cst_41 = arith.constant dense<0.000000e+00> : vector<2x8x8xf32>
    %105 = tpu.matmul %104, %90, %cst_41 {dimension_numbers = #tpu.dot_dimension_numbers<[2], [1], [1], [2], [0, 0, 0, 1, 1, 2], [0], [0]>} : vector<2x8x8xbf16>, vector<2x8x8xbf16>, vector<2x8x8xf32> -> vector<2x8x8xf32>
    "tpu.trace_stop"() : () -> ()
    %c16 = arith.constant 16 : index
    %c0_42 = arith.constant 0 : index
    %106 = vector.load %arg9[%c16, %c0_42] : memref<32x32xf32, #tpu.memory_space<vmem>>, vector<8x32xf32>
    %107 = arith.truncf %106 : vector<8x32xf32> to vector<8x32xbf16>
    %108 = vector.shape_cast %105 : vector<2x8x8xf32> to vector<16x8xf32>
    %109 = arith.truncf %108 : vector<16x8xf32> to vector<16x8xbf16>
    %cst_43 = arith.constant dense<0.000000e+00> : vector<16x32xf32>
    %110 = tpu.matmul %109, %107, %cst_43 {dimension_numbers = #tpu.dot_dimension_numbers<[1], [0], [0], [1], [0, 0, 1, 1], [], []>} : vector<16x8xbf16>, vector<8x32xbf16>, vector<16x32xf32> -> vector<16x32xf32>
    %111 = arith.addf %84, %110 : vector<16x32xf32>
    %112 = vector.extract_strided_slice %20 {offsets = [0, 0, 24], sizes = [2, 8, 8], strides = [1, 1, 1]} : vector<2x8x32xf32> to vector<2x8x8xf32>
    %113 = arith.truncf %112 : vector<2x8x8xf32> to vector<2x8x8xbf16>
    %114 = vector.extract_strided_slice %21 {offsets = [0, 0, 24], sizes = [2, 8, 8], strides = [1, 1, 1]} : vector<2x8x32xf32> to vector<2x8x8xf32>
    %115 = arith.truncf %114 : vector<2x8x8xf32> to vector<2x8x8xbf16>
    %116 = vector.extract_strided_slice %22 {offsets = [0, 0, 24], sizes = [2, 8, 8], strides = [1, 1, 1]} : vector<2x8x32xf32> to vector<2x8x8xf32>
    %117 = arith.truncf %116 : vector<2x8x8xf32> to vector<2x8x8xbf16>
    "tpu.trace_start"() <{level = 10 : i32, message = "bqd,bkd->bqk"}> : () -> ()
    %cst_44 = arith.constant dense<0.000000e+00> : vector<2x8x8xf32>
    %118 = tpu.matmul %113, %115, %cst_44 {dimension_numbers = #tpu.dot_dimension_numbers<[2], [2], [1], [1], [0, 0, 0, 1, 1, 1], [0], [0]>} : vector<2x8x8xbf16>, vector<2x8x8xbf16>, vector<2x8x8xf32> -> vector<2x8x8xf32>
    "tpu.trace_stop"() : () -> ()
    %119 = arith.addf %118, %28 : vector<2x8x8xf32>
    %120 = arith.addf %93, %119 : vector<2x8x8xf32>
    %cst_45 = arith.constant dense<0xFF800000> : vector<2x8xf32>
    %121 = vector.multi_reduction <maximumf>, %119, %cst_45 [2] : vector<2x8x8xf32> to vector<2x8xf32>
    %122 = vector.shape_cast %121 : vector<2x8xf32> to vector<2x8x1xf32>
    %123 = vector.broadcast %122 : vector<2x8x1xf32> to vector<2x8x8xf32>
    %124 = arith.subf %119, %123 : vector<2x8x8xf32>
    %125 = math.exp %124 : vector<2x8x8xf32>
    %cst_46 = arith.constant dense<0.000000e+00> : vector<2x8xf32>
    %126 = vector.multi_reduction <add>, %125, %cst_46 [2] : vector<2x8x8xf32> to vector<2x8xf32>
    %127 = vector.shape_cast %126 : vector<2x8xf32> to vector<2x8x1xf32>
    %128 = tpu.reciprocal %127 {approx = true} : vector<2x8x1xf32> -> vector<2x8x1xf32>
    %129 = vector.broadcast %128 : vector<2x8x1xf32> to vector<2x8x8xf32>
    %130 = arith.mulf %125, %129 : vector<2x8x8xf32>
    %131 = arith.truncf %130 : vector<2x8x8xf32> to vector<2x8x8xbf16>
    "tpu.trace_start"() <{level = 10 : i32, message = "bqk,bkd->bqd"}> : () -> ()
    %cst_47 = arith.constant dense<0.000000e+00> : vector<2x8x8xf32>
    %132 = tpu.matmul %131, %117, %cst_47 {dimension_numbers = #tpu.dot_dimension_numbers<[2], [1], [1], [2], [0, 0, 0, 1, 1, 2], [0], [0]>} : vector<2x8x8xbf16>, vector<2x8x8xbf16>, vector<2x8x8xf32> -> vector<2x8x8xf32>
    "tpu.trace_stop"() : () -> ()
    %c24 = arith.constant 24 : index
    %c0_48 = arith.constant 0 : index
    %133 = vector.load %arg9[%c24, %c0_48] : memref<32x32xf32, #tpu.memory_space<vmem>>, vector<8x32xf32>
    %134 = arith.truncf %133 : vector<8x32xf32> to vector<8x32xbf16>
    %135 = vector.shape_cast %132 : vector<2x8x8xf32> to vector<16x8xf32>
    %136 = arith.truncf %135 : vector<16x8xf32> to vector<16x8xbf16>
    %cst_49 = arith.constant dense<0.000000e+00> : vector<16x32xf32>
    %137 = tpu.matmul %136, %134, %cst_49 {dimension_numbers = #tpu.dot_dimension_numbers<[1], [0], [0], [1], [0, 0, 1, 1], [], []>} : vector<16x8xbf16>, vector<8x32xbf16>, vector<16x32xf32> -> vector<16x32xf32>
    %138 = arith.addf %111, %137 : vector<16x32xf32>
    %139 = vector.shape_cast %138 : vector<16x32xf32> to vector<2x8x32xf32>
    %c0_50 = arith.constant 0 : index
    %c0_51 = arith.constant 0 : index
    %c0_52 = arith.constant 0 : index
    %140 = vector.load %arg10[%c0_50, %c0_51, %c0_52] : memref<2x8x32xf32, #tpu.memory_space<vmem>>, vector<2x8x32xf32>
    tpu.vector_store %arg10[%c0_50, %c0_51, %c0_52], %139 {strides = array<i32>} : memref<2x8x32xf32, #tpu.memory_space<vmem>>, vector<2x8x32xf32>,
    %cst_53 = arith.constant 2.500000e-01 : f32
    %141 = vector.broadcast %cst_53 : f32 to vector<2x8x8xf32>
    %142 = arith.mulf %120, %141 : vector<2x8x8xf32>
    %cst_54 = arith.constant dense<0xFF800000> : vector<2x8xf32>
    %143 = vector.multi_reduction <maximumf>, %142, %cst_54 [2] : vector<2x8x8xf32> to vector<2x8xf32>
    %144 = vector.shape_cast %143 : vector<2x8xf32> to vector<2x8x1xf32>
    %145 = vector.broadcast %144 : vector<2x8x1xf32> to vector<2x8x8xf32>
    %146 = arith.subf %142, %145 : vector<2x8x8xf32>
    %147 = math.exp %146 : vector<2x8x8xf32>
    %cst_55 = arith.constant dense<0.000000e+00> : vector<2x8xf32>
    %148 = vector.multi_reduction <add>, %147, %cst_55 [2] : vector<2x8x8xf32> to vector<2x8xf32>
    %149 = vector.shape_cast %148 : vector<2x8xf32> to vector<2x8x1xf32>
    %150 = tpu.reciprocal %149 {approx = true} : vector<2x8x1xf32> -> vector<2x8x1xf32>
    %151 = vector.broadcast %150 : vector<2x8x1xf32> to vector<2x8x8xf32>
    %152 = arith.mulf %147, %151 : vector<2x8x8xf32>
    %c0_56 = arith.constant 0 : index
    %c0_57 = arith.constant 0 : index
    %c0_58 = arith.constant 0 : index
    %153 = vector.load %arg11[%c0_56, %c0_57, %c0_58] : memref<2x8x8xf32, #tpu.memory_space<vmem>>, vector<2x8x8xf32>
    tpu.vector_store %arg11[%c0_56, %c0_57, %c0_58], %152 {strides = array<i32>} : memref<2x8x8xf32, #tpu.memory_space<vmem>>, vector<2x8x8xf32>,
    return
  }
  func.func @transform_0(%arg0: i32, %arg1: i32) -> (i32, i32, i32) {
    %c0_i32 = arith.constant 0 : i32
    %c0_i32_0 = arith.constant 0 : i32
    return %arg0, %arg1, %c0_i32 : i32, i32, i32
  }
  func.func @transform_1(%arg0: i32, %arg1: i32) -> (i32, i32, i32) {
    %c0_i32 = arith.constant 0 : i32
    %c0_i32_0 = arith.constant 0 : i32
    %c0_i32_1 = arith.constant 0 : i32
    return %arg0, %c0_i32, %c0_i32_0 : i32, i32, i32
  }
  func.func @transform_2(%arg0: i32, %arg1: i32) -> (i32, i32, i32) {
    %c0_i32 = arith.constant 0 : i32
    %c0_i32_0 = arith.constant 0 : i32
    %c0_i32_1 = arith.constant 0 : i32
    return %arg0, %c0_i32, %c0_i32_0 : i32, i32, i32
  }
  func.func @transform_3(%arg0: i32, %arg1: i32) -> (i32, i32, i32) {
    %c0_i32 = arith.constant 0 : i32
    %c0_i32_0 = arith.constant 0 : i32
    return %arg0, %arg1, %c0_i32 : i32, i32, i32
  }
  func.func @transform_4(%arg0: i32, %arg1: i32) -> (i32, i32) {
    %c0_i32 = arith.constant 0 : i32
    %c0_i32_0 = arith.constant 0 : i32
    %c0_i32_1 = arith.constant 0 : i32
    return %c0_i32, %c0_i32_0 : i32, i32
  }
  func.func @transform_5(%arg0: i32, %arg1: i32) -> (i32, i32) {
    %c0_i32 = arith.constant 0 : i32
    %c0_i32_0 = arith.constant 0 : i32
    %c0_i32_1 = arith.constant 0 : i32
    return %c0_i32, %c0_i32_0 : i32, i32
  }
  func.func @transform_6(%arg0: i32, %arg1: i32) -> (i32, i32) {
    %c0_i32 = arith.constant 0 : i32
    %c0_i32_0 = arith.constant 0 : i32
    %c0_i32_1 = arith.constant 0 : i32
    return %c0_i32, %c0_i32_0 : i32, i32
  }
  func.func @transform_7(%arg0: i32, %arg1: i32) -> (i32, i32) {
    %c0_i32 = arith.constant 0 : i32
    %c0_i32_0 = arith.constant 0 : i32
    %c0_i32_1 = arith.constant 0 : i32
    return %c0_i32, %c0_i32_0 : i32, i32
  }
  func.func @transform_8(%arg0: i32, %arg1: i32) -> (i32, i32, i32) {
    %c0_i32 = arith.constant 0 : i32
    %c0_i32_0 = arith.constant 0 : i32
    return %arg0, %arg1, %c0_i32 : i32, i32, i32
  }
  func.func @transform_9(%arg0: i32, %arg1: i32) -> (i32, i32, i32) {
    %c0_i32 = arith.constant 0 : i32
    %c0_i32_0 = arith.constant 0 : i32
    return %arg0, %arg1, %c0_i32 : i32, i32, i32
  }
}

</mosaic_0001>

<bundles_post_ra>
// kernel: tpu_custom_call.1
= control target key start
LH: loop header
LB: loop body
LE: loop exit
PB: predicated region body
PF: predicated region fallthrough
CT: control target
= control target key end

     0   :  { %15 = vsyncpa [#allocation3], 0  ;;  %s1501_s0 = inlined_call_operand.hbm [shape: f32[2,8,32], index: 0, kind: input, shape index: {}]   ;;  %s1502_s1 = inlined_call_operand.hbm [shape: f32[2,8,32], index: 1, kind: input, shape index: {}]   ;;  %s1503_s2 = inlined_call_operand.hbm [shape: f32[2,8,32], index: 2, kind: input, shape index: {}]   ;;  %s1504_s3 = inlined_call_operand.hbm [shape: f32[2,8,8], index: 3, kind: input, shape index: {}]   ;;  %s1505_s4 = inlined_call_operand.hbm [shape: f32[32,32], index: 4, kind: input, shape index: {}]   ;;  %s1506_s5 = inlined_call_operand.hbm [shape: f32[32,32], index: 5, kind: input, shape index: {}]   ;;  %s1507_s6 = inlined_call_operand.hbm [shape: f32[32,32], index: 6, kind: input, shape index: {}]   ;;  %s1508_s7 = inlined_call_operand.hbm [shape: f32[32,32], index: 7, kind: input, shape index: {}]   ;;  %s1509_s8 = inlined_call_operand.hbm [shape: f32[2,8,32], index: 8, kind: output, shape index: {0}]   ;;  %s1510_s9 = inlined_call_operand.hbm [shape: f32[2,8,8], index: 9, kind: output, shape index: {1}]  }
   0x1   :  { %16 = vsyncpa [#allocation6], 0 }
   0x2   :  { %17 = vsyncpa [#allocation9], 0 }
   0x3   :  { %18 = vsyncpa [#allocation12], 0 }
   0x4   :  { %19 = vsyncpa [#allocation15], 0 }
   0x5   :  { %20 = vsyncpa [#allocation4], 0 }
   0x6   :  { %21 = vsyncpa [#allocation18], 0  ;;  %s39_s11 = sshll.u32 %s1502_s1, 4  ;;  %s1214_s12 = smov [#allocation5]   ;;  %s40_s11 = int_to_ptr.hbm [resolvable:$true] %s39_s11 }
   0x7   :  { %s41_s13 = sshll.u32 %s1214_s12, 4  ;;  %s65_s16 = sshll.u32 %s1504_s3, 4  ;;  %s42_s13 = int_to_ptr.vmem [resolvable:$true] %s41_s13  ;;  %s66_s16 = int_to_ptr.hbm [resolvable:$true] %s65_s16 }
   0x8   :  { %s1215_s17 = smov 128   ;;  %s1216_s18 = smov 8  }
   0x9   :  { %47 = dma.hbm_to_vmem [thread:$0]  %s40_s11, 256, %s42_s13, [#allocation6], %s1215_s17, %s1215_s17, %s1216_s18  }
   0xa   :  { %s1217_s19 = smov [#allocation8]   ;;  %s91_s1 = sshll.u32 %s1506_s5, 4  ;;  %s92_s1 = int_to_ptr.hbm [resolvable:$true] %s91_s1 }
   0xb   :  { %s67_s20 = sshll.u32 %s1217_s19, 4  ;;  %s26_s24 = sshll.u32 %s1501_s0, 4  ;;  %s68_s20 = int_to_ptr.vmem [resolvable:$true] %s67_s20  ;;  %s27_s24 = int_to_ptr.hbm [resolvable:$true] %s26_s24 }
   0xc   :  { %73 = dma.hbm_to_vmem [thread:$0]  %s66_s16, 256, %s68_s20, [#allocation9], %s1215_s17, %s1215_s17, %s1216_s18  }
   0xd   :  { %s1218_s25 = smov [#allocation11]   ;;  %s1219_s27 = smov [#allocation2]  }
   0xe   :  { %s93_s26 = sshll.u32 %s1218_s25, 4  ;;  %s28_s5 = sshll.u32 %s1219_s27, 4  ;;  %s94_s26 = int_to_ptr.vmem [resolvable:$true] %s93_s26  ;;  %s29_s5 = int_to_ptr.vmem [resolvable:$true] %s28_s5 }
   0xf   :  { %99 = dma.hbm_to_vmem [thread:$0]  %s92_s1, 512, %s94_s26, [#allocation12], %s1215_s17, %s1215_s17, %s1216_s18  }
  0x10   :  { %s52_s30 = sshll.u32 %s1503_s2, 4  ;;  %s78_s11 = sshll.u32 %s1505_s4, 4  ;;  %s53_s30 = int_to_ptr.hbm [resolvable:$true] %s52_s30  ;;  %s79_s11 = int_to_ptr.hbm [resolvable:$true] %s78_s11 }
  0x11   :  { %34 = dma.hbm_to_vmem [thread:$0]  %s27_s24, 256, %s29_s5, [#allocation3], %s1215_s17, %s1215_s17, %s1216_s18  }
  0x12   :  { %s1220_s12 = smov [#allocation7]   ;;  %s1221_s14 = smov [#allocation10]  }
  0x13   :  { %s54_s13 = sshll.u32 %s1220_s12, 4  ;;  %s80_s2 = sshll.u32 %s1221_s14, 4  ;;  %s55_s13 = int_to_ptr.vmem [resolvable:$true] %s54_s13  ;;  %s81_s2 = int_to_ptr.vmem [resolvable:$true] %s80_s2 }
  0x14   :  { %60 = dma.hbm_to_vmem [thread:$0]  %s53_s30, 256, %s55_s13, [#allocation6], %s1215_s17, %s1215_s17, %s1216_s18  }
  0x15   :  { %s104_s19 = sshll.u32 %s1507_s6, 4  ;;  %s117_s21 = sshll.u32 %s1508_s7, 4  ;;  %s105_s19 = int_to_ptr.hbm [resolvable:$true] %s104_s19  ;;  %s118_s21 = int_to_ptr.hbm [resolvable:$true] %s117_s21 }
  0x16   :  { %86 = dma.hbm_to_vmem [thread:$0]  %s79_s11, 512, %s81_s2, [#allocation9], %s1215_s17, %s1215_s17, %s1216_s18  }
  0x17   :  { %s1222_s22 = smov [#allocation13]   ;;  %s1223_s3 = smov [#allocation14]  }
  0x18   :  { %s106_s1 = sshll.u32 %s1222_s22, 4  ;;  %s119_s6 = sshll.u32 %s1223_s3, 4  ;;  %s107_s1 = int_to_ptr.vmem [resolvable:$true] %s106_s1  ;;  %s120_s6 = int_to_ptr.vmem [resolvable:$true] %s119_s6 }
  0x19   :  { %112 = dma.hbm_to_vmem [thread:$0]  %s105_s19, 512, %s107_s1, [#allocation12], %s1215_s17, %s1215_s17, %s1216_s18  }
  0x1a   :  { %125 = dma.hbm_to_vmem [thread:$0]  %s118_s21, 512, %s120_s6, [#allocation15], %s1215_s17, %s1215_s17, %s1216_s18  }
  0x1b   :  { %1200 = dma.done.wait [#allocation3], 256  }
  0x1c   :  { %1201 = vsyncadd [#allocation3], 4294967040 }
  0x1d   :  { %1202 = dma.done.wait [#allocation6], 512  }
  0x1e   :  { %1203 = vsyncadd [#allocation6], 4294966784 }
  0x1f   :  { %1204 = dma.done.wait [#allocation9], 768  }
  0x20   :  { %1205 = vsyncadd [#allocation9], 4294966528 }
  0x21   :  { %1206 = dma.done.wait [#allocation12], 1024  }
  0x22   :  { %1207 = vsyncadd [#allocation12], 4294966272 }
  0x23   :  { %1208 = dma.done.wait [#allocation15], 512  }
  0x24   :  { %1209 = vsyncadd [#allocation15], 4294966784  ;;  %v170_v0 = vld [vmem:[#allocation10 + $0x10] sm:$0xff]  ;;  %v171_v1 = vld [vmem:[#allocation10 + $0x18] sm:$0xff]  ;;  %vm174_vm0 = vcmask 261120   ;;  %vm252_vm1 = vcmask 64512  }
  0x25   :  { %v194_v2 = vld [vmem:[#allocation11 + $0x10] sm:$0xff]  ;;  %v173_v3 = vpack.c.bf16 %v171_v1, %v170_v0  ;;  %v195_v4 = vld [vmem:[#allocation11 + $0x18] sm:$0xff]  ;;  %v168_v5 = vld [vmem:[#allocation10] sm:$0xff]  ;;  %s1224_s7 = smov 120   ;;  %v1225_v54 = vmov 0.0   ;;  %s1226_s23 = smov 112  }
  0x26   :  { %v169_v6 = vld [vmem:[#allocation10 + $0x8] sm:$0xff]  ;;  %v197_v7 = vpack.c.bf16 %v195_v4, %v194_v2  ;;  %v192_v8 = vld [vmem:[#allocation11] sm:$0xff]  ;;  %v162_v14 = vld [vmem:[#allocation5] sm:$0xff]  ;;  %vm320_vm4 = vcmask 1043456   ;;  %s1227_s24 = smov 104   ;;  %s1228_s25 = smov [#allocation17]  }
  0x27   :  { %v193_v9 = vld [vmem:[#allocation11 + $0x8] sm:$0xff]  ;;  %184 = vmatpush.bf16.msra.mxu0 %v173_v3  ;;  %v172_v10 = vpack.c.bf16 %v169_v6, %v168_v5  ;;  %v159_v11 = vld [vmem:[#allocation2] sm:$0xff]  ;;  %v163_v15 = vld [vmem:[#allocation5 + $0x8] sm:$0xff]  ;;  %s857_s26 = sshll.u32 %s1228_s25, 4  ;;  %s859_s28 = sshll.u32 %s1510_s9, 4  ;;  %s858_s26 = int_to_ptr.vmem [resolvable:$true] %s857_s26  ;;  %s860_s28 = int_to_ptr.hbm [resolvable:$true] %s859_s28 }
  0x28   :  { %v160_v12 = vld [vmem:[#allocation2 + $0x8] sm:$0xff]  ;;  %207 = vmatpush.bf16.msra.mxu1 %v197_v7  ;;  %v196_v13 = vpack.c.bf16 %v193_v9, %v192_v8  ;;  %v164_v17 = vpack.c.bf16 %v163_v15, %v162_v14  ;;  %v217_v38 = vld [vmem:[#allocation13 + $0x10] sm:$0xff]  ;;  %v218_v39 = vld [vmem:[#allocation13 + $0x18] sm:$0xff]  ;;  %s1229_s29 = smov [#allocation16]   ;;  %s846_s11 = sshll.u32 %s1509_s8, 4  ;;  %s847_s11 = int_to_ptr.hbm [resolvable:$true] %s846_s11 }
  0x29   :  { %v161_v16 = vpack.c.bf16 %v160_v12, %v159_v11  ;;  %v220_v40 = vpack.c.bf16 %v218_v39, %v217_v38  ;;  %v215_v41 = vld [vmem:[#allocation13] sm:$0xff]  ;;  %v216_v42 = vld [vmem:[#allocation13 + $0x8] sm:$0xff]  ;;  %v240_v52 = vld [vmem:[#allocation8] sm:$0xff]  ;;  %s844_s30 = sshll.u32 %s1229_s29, 4  ;;  %s845_s30 = int_to_ptr.vmem [resolvable:$true] %s844_s30 }
  0x2a   :  { %v219_v43 = vpack.c.bf16 %v216_v42, %v215_v41  ;;  %v165_v44 = vld [vmem:[#allocation7] sm:$0xff]  ;;  %v166_v45 = vld [vmem:[#allocation7 + $0x8] sm:$0xff]  ;;  %vm242_vm2 = vcmp.gt.f32.partialorder %v240_v52, 0.5  ;;  %v241_v6 = vld [vmem:[#allocation8 + $0x8] sm:$0xff] }
  0x2b   :  { %185 = vmatpush.bf16.msra.mxu0 %v172_v10  ;;  %230 = vmatpush.bf16.msra.mxu2 %v220_v40  ;;  %v167_v46 = vpack.c.bf16 %v166_v45, %v165_v44  ;;  %v1355_v55 = vsel %vm242_vm2, -1e+18, %v1225_v54  ;;  %vm243_vm3 = vcmp.gt.f32.partialorder %v241_v6, 0.5 }
  0x2c   :  { %208 = vmatpush.bf16.msra.mxu1 %v196_v13  ;;  %v1369_v11 = vsel %vm243_vm3, -1e+18, %v1225_v54 }
  0x2e   :  { %881 = vmatmul.msk.bf16.vlgmr.msra.gmra.mxu0 %vm174_vm0, %v161_v16 }
  0x2f   :  { %882 = vmatmul.msk.bf16.vlgmr.msra.gmra.mxu1 %vm174_vm0, %v164_v17  ;;  %231 = vmatpush.bf16.msra.mxu2 %v219_v43 }
  0x32   :  { %883 = vmatmul.msk.bf16.vlgmr.msra.gmra.mxu2 %vm174_vm0, %v167_v46 }
  0xab   :  { %v187_v18 = vpop.f32.mrf.mxu0 }
  0xac   :  { %v238_v19 = vmul.f32 0.35355338, %v187_v18  ;;  %v210_v20 = vpop.f32.mrf.mxu1 }
  0xad   :  { %v248_v21 = vpack.c.bf16 %v210_v20, %v210_v20 }
  0xae   :  { %v246_v22 = vpack.c.bf16 %v238_v19, %v238_v19 }
  0xaf   :  { %v365_v23 = vunpack.c.l.b16 %v248_v21  ;;  %v257_v24 = vsel %vm252_vm1, %v248_v21, 0 }
  0xb0   :  { %266 = vmatpush.bf16.xpose.msra.mxu3 %v257_v24  ;;  %v360_v26 = vunpack.c.l.b16 %v246_v22 }
  0xb1   :  { %v1331_v25 = vpack.c.b16 %v365_v23, %v365_v23 }
  0xb2   :  { %v1335_v31 = vpack.c.b16 %v360_v26, %v360_v26 }
  0xb3   :  { %367 = vrot.lane.b32.xlu0 %v1331_v25, %s1224_s7  ;;  %v189_v27 = vpop.f32.mrf.mxu0 }
  0xb4   :  { %v212_v28 = vpop.f32.mrf.mxu1  ;;  %v239_v29 = vmul.f32 0.35355338, %v189_v27 }
  0xb5   :  { %v249_v30 = vpack.c.bf16 %v212_v28, %v212_v28  ;;  %v233_v10 = vpop.f32.mrf.mxu2 }
  0xb6   :  { %v247_v34 = vpack.c.bf16 %v239_v29, %v239_v29  ;;  %v250_v13 = vpack.c.bf16 %v233_v10, %v233_v10 }
  0xb7   :  { %v394_v32 = vunpack.c.l.b16 %v249_v30  ;;  %884 = vmatmul.msk.bf16.vlgmr.msra.gmra.mxu3 %vm252_vm1, %v246_v22  ;;  %v276_v33 = vsel %vm252_vm1, %v249_v30, 0 }
  0xb8   :  { %285 = vmatpush.bf16.xpose.msrb.mxu0 %v276_v33  ;;  %v389_v36 = vunpack.c.l.b16 %v247_v34  ;;  %v444_v14 = vunpack.c.l.b16 %v250_v13  ;;  %v322_v19 = vsel %vm320_vm4, %v250_v13, 0 }
  0xb9   :  { %v1339_v35 = vpack.c.b16 %v394_v32, %v394_v32  ;;  %331 = vmatpush.bf16.msrb.mxu1 %v322_v19 }
  0xba   :  { %v1346_v37 = vpack.c.b16 %v389_v36, %v389_v36  ;;  %v1376_v16 = vpack.c.b16 %v444_v14, %v444_v14 }
  0xbb   :  { %396 = vrot.lane.b32.xlu1 %v1339_v35, %s1224_s7  ;;  %362 = vrot.lane.b32.xlu0 %v1335_v31, %s1224_s7 }
  0xbd   :  { %v235_v20 = vpop.f32.mrf.mxu2 }
  0xbe   :  { %v251_v21 = vpack.c.bf16 %v235_v20, %v235_v20 }
  0xbf   :  { %885 = vmatmul.msk.bf16.vlgmr.msrb.gmra.mxu0 %vm252_vm1, %v247_v34 }
  0xc0   :  { %v341_v24 = vsel %vm320_vm4, %v251_v21, 0 }
  0xc1   :  { %350 = vmatpush.bf16.msrb.mxu2 %v341_v24 }
  0xc3   :  { %391 = vrot.lane.b32.xlu1 %v1346_v37, %s1224_s7 }
 0x125   :  { %v368_v47 = vpop.permute.xlu0 %367 }
 0x126   :  { %v373_v48 = vsel %vm252_vm1, %v368_v47, 0 }
 0x127   :  { %382 = vmatpush.bf16.xpose.msrb.mxu3 %v373_v48 }
 0x12d   :  { %v397_v49 = vpop.permute.xlu1 %396  ;;  %v363_v50 = vpop.permute.xlu0 %362 }
 0x12e   :  { %v402_v51 = vsel %vm252_vm1, %v397_v49, 0  ;;  %888 = vmatmul.msk.bf16.vlgmr.msrb.gmra.mxu3 %vm252_vm1, %v363_v50 }
 0x12f   :  { %411 = vmatpush.bf16.xpose.msra.mxu0 %v402_v51  ;;  %v468_v51 = vunpack.c.l.b16 %v251_v21 }
 0x131   :  { %v1402_v52 = vpack.c.b16 %v468_v51, %v468_v51 }
 0x135   :  { %v392_v53 = vpop.permute.xlu1 %391 }
 0x136   :  { %889 = vmatmul.msk.bf16.vlgmr.msra.gmra.mxu0 %vm252_vm1, %v392_v53 }
 0x13a   :  { %v268_v56 = vpop.f32.mrf.mxu3 }
 0x13b   :  { %v1358_v57 = vadd.f32 %v268_v56, %v1355_v55 }
 0x13c   :  { %v287_v58 = vpop.f32.mrf.mxu0 }
 0x13d   :  { %v293_v59 = vsel %vm252_vm1, %v1358_v57, -inf  ;;  %v1385_v17 = vadd.f32 %v287_v58, %v1369_v11 }
 0x13e   :  { %294 = vmax.xlane.f32.xlu2 %v293_v59 }
 0x13f   :  { %v296_v18 = vsel %vm252_vm1, %v1385_v17, -inf }
 0x142   :  { %v270_v60 = vpop.f32.mrf.mxu3 }
 0x144   :  { %v289_v61 = vpop.f32.mrf.mxu0 }
 0x1b1   :  { %v384_v62 = vpop.f32.mrf.mxu3  ;;  %v295_v63 = vpop.xlane.xlu2 %294 }
 0x1b2   :  { %v1363_v0 = vadd.f32 %v384_v62, %v1355_v55  ;;  %v299_v1 = vsub.f32 %v1358_v57, %v295_v63  ;;  %v491_v62 = vld [vmem:[#allocation14 + $0x8] sm:$0xff] }
 0x1b3   :  { %v413_v2 = vpop.f32.mrf.mxu0 }
 0x1b4   :  { %v301_v3 = vmul.f32 1.442695, %v299_v1  ;;  %v419_v4 = vsel %vm252_vm1, %v1363_v0, -inf  ;;  %v1372_v12 = vadd.f32 %v413_v2, %v1369_v11  ;;  %v492_v1 = vpack.c.bf16 %v491_v62, %v491_v62 }
 0x1b5   :  { %420 = vmax.xlane.f32.xlu2 %v419_v4 }
 0x1b6   :  { %920 = vpow2.f32 %v301_v3  ;;  %v422_v15 = vsel %vm252_vm1, %v1372_v12, -inf  ;;  %v498_v3 = vsel %vm320_vm4, %v492_v1, 0 }
 0x1b7   :  { %507 = vmatpush.bf16.msra.mxu3 %v498_v3 }
 0x1b9   :  { %v386_v5 = vpop.f32.mrf.mxu3 }
 0x1bb   :  { %v415_v7 = vpop.f32.mrf.mxu0 }
 0x1bc   :  { %v921_v8 = vpop.eup %920 }
 0x1bd   :  { %v305_v9 = vsel %vm252_vm1, %v921_v8, 0.0 }
 0x1be   :  { %306 = vadd.xlane.f32.xlu0 %v305_v9 }
 0x1c6   :  { %423 = vmax.xlane.f32.xlu0 %v422_v15 }
 0x1cd   :  { %446 = vrot.lane.b32.xlu2 %v1376_v16, %s1224_s7 }
 0x1d5   :  { %536 = vrot.lane.b32.xlu2 %v1331_v25, %s1226_s23 }
 0x1dd   :  { %534 = vrot.lane.b32.xlu2 %v1335_v31, %s1226_s23 }
 0x206   :  { %297 = vmax.xlane.f32.xlu2 %v296_v18 }
 0x228   :  { %v421_v22 = vpop.xlane.xlu2 %420 }
 0x229   :  { %v425_v23 = vsub.f32 %v1363_v0, %v421_v22 }
 0x22b   :  { %v427_v26 = vmul.f32 1.442695, %v425_v23  ;;  %v356_v23 = vld [vmem:[#allocation14] sm:$0xff] }
 0x22c   :  { %v357_v24 = vpack.c.bf16 %v356_v23, %v356_v23 }
 0x22d   :  { %922 = vpow2.f32 %v427_v26 }
 0x22e   :  { %v518_v26 = vsel %vm320_vm4, %v357_v24, 0 }
 0x22f   :  { %527 = vmatpush.bf16.msrb.mxu0 %v518_v26 }
 0x230   :  { %v447_v27 = vpop.permute.xlu2 %446 }
 0x231   :  { %v452_v28 = vsel %vm320_vm4, %v447_v27, 0  ;;  %v307_v29 = vpop.xlane.xlu0 %306 }
 0x232   :  { %924 = vrcp.f32 %v307_v29  ;;  %461 = vmatpush.bf16.msra.mxu1 %v452_v28 }
 0x233   :  { %v923_v30 = vpop.eup %922 }
 0x234   :  { %v431_v32 = vsel %vm252_vm1, %v923_v30, 0.0 }
 0x235   :  { %432 = vadd.xlane.f32.xlu1 %v431_v32 }
 0x238   :  { %v925_v33 = vpop.eup %924  ;;  %v537_v38 = vpop.permute.xlu2 %536 }
 0x239   :  { %v313_v34 = vmul.f32 %v925_v33, %v921_v8  ;;  %v424_v36 = vpop.xlane.xlu0 %423  ;;  %v542_v42 = vsel %vm252_vm1, %v537_v38, 0 }
 0x23a   :  { %v426_v39 = vsub.f32 %v1372_v12, %v424_v36 }
 0x23b   :  { %v315_v40 = vpack.c.bf16 %v313_v34, %v313_v34 }
 0x23c   :  { %v429_v41 = vmul.f32 1.442695, %v426_v39 }
 0x23d   :  { %886 = vmatmul.msk.bf16.vlgmr.msrb.gmra.mxu1 %vm252_vm1, %v315_v40 }
 0x23e   :  { %926 = vpow2.f32 %v429_v41  ;;  %551 = vmatpush.bf16.xpose.msrb.mxu1 %v542_v42 }
 0x240   :  { %v535_v45 = vpop.permute.xlu2 %534 }
 0x244   :  { %v927_v43 = vpop.eup %926 }
 0x245   :  { %v434_v44 = vsel %vm252_vm1, %v927_v43, 0.0 }
 0x246   :  { %435 = vadd.xlane.f32.xlu0 %v434_v44 }
 0x25a   :  { %559 = vrot.lane.b32.xlu0 %v1339_v35, %s1226_s23 }
 0x279   :  { %v298_v46 = vpop.xlane.xlu2 %297 }
 0x27a   :  { %v300_v47 = vsub.f32 %v1385_v17, %v298_v46 }
 0x27c   :  { %v303_v48 = vmul.f32 1.442695, %v300_v47 }
 0x27e   :  { %928 = vpow2.f32 %v303_v48 }
 0x284   :  { %v929_v49 = vpop.eup %928 }
 0x285   :  { %v308_v50 = vsel %vm252_vm1, %v929_v49, 0.0 }
 0x286   :  { %309 = vadd.xlane.f32.xlu1 %v308_v50 }
 0x29f   :  { %470 = vrot.lane.b32.xlu1 %v1402_v52, %s1224_s7 }
 0x2a7   :  { %557 = vrot.lane.b32.xlu1 %v1346_v37, %s1226_s23 }
 0x2a8   :  { %v433_v53 = vpop.xlane.xlu1 %432 }
 0x2a9   :  { %930 = vrcp.f32 %v433_v53 }
 0x2af   :  { %v931_v54 = vpop.eup %930  ;;  %606 = vrot.lane.b32.xlu1 %v1376_v16, %s1226_s23 }
 0x2b0   :  { %v439_v56 = vmul.f32 %v931_v54, %v923_v30 }
 0x2b2   :  { %v441_v58 = vpack.c.bf16 %v439_v56, %v439_v56 }
 0x2b4   :  { %890 = vmatmul.msk.bf16.vlgmr.msra.gmra.mxu1 %vm252_vm1, %v441_v58 }
 0x2b7   :  { %698 = vrot.lane.b32.xlu1 %v1339_v35, %s1227_s24 }
 0x2b9   :  { %v436_v35 = vpop.xlane.xlu0 %435 }
 0x2ba   :  { %v333_v59 = vpop.f32.mrf.mxu1 }
 0x2bf   :  { %673 = vrot.lane.b32.xlu1 %v1335_v31, %s1227_s24 }
 0x2c2   :  { %v335_v60 = vpop.f32.mrf.mxu1 }
 0x2c4   :  { %894 = vmatmul.msk.bf16.vlgmr.msrb.gmra.mxu1 %vm252_vm1, %v535_v45 }
 0x2c7   :  { %696 = vrot.lane.b32.xlu1 %v1346_v37, %s1227_s24 }
 0x2cc   :  { %v560_v6 = vpop.permute.xlu0 %559 }
 0x2cd   :  { %v565_v8 = vsel %vm252_vm1, %v560_v6, 0 }
 0x2f9   :  { %v310_v61 = vpop.xlane.xlu1 %309 }
 0x2fa   :  { %932 = vrcp.f32 %v310_v61 }
 0x2fb   :  { %934 = vrcp.f32 %v436_v35 }
 0x300   :  { %v933_v63 = vpop.eup %932 }
 0x301   :  { %v314_v2 = vmul.f32 %v933_v63, %v929_v49  ;;  %v935_v31 = vpop.eup %934 }
 0x302   :  { %v440_v5 = vmul.f32 %v935_v31, %v927_v43  ;;  %v417_v31 = vadd.f32 %v1363_v0, %v1358_v57 }
 0x303   :  { %v316_v4 = vpack.c.bf16 %v314_v2, %v314_v2 }
 0x304   :  { %v442_v9 = vpack.c.bf16 %v440_v5, %v440_v5 }
 0x305   :  { %887 = vmatmul.msk.bf16.vlgmr.msrb.gmra.mxu2 %vm252_vm1, %v316_v4 }
 0x311   :  { %v471_v7 = vpop.permute.xlu1 %470 }
 0x312   :  { %v476_v37 = vsel %vm320_vm4, %v471_v7, 0 }
 0x313   :  { %485 = vmatpush.bf16.msra.mxu2 %v476_v37 }
 0x316   :  { %891 = vmatmul.msk.bf16.vlgmr.msra.gmra.mxu2 %vm252_vm1, %v442_v9 }
 0x317   :  { %574 = vmatpush.bf16.xpose.msrb.mxu2 %v565_v8 }
 0x319   :  { %v558_v10 = vpop.permute.xlu1 %557 }
 0x321   :  { %v607_v13 = vpop.permute.xlu1 %606 }
 0x322   :  { %v612_v14 = vsel %vm320_vm4, %v607_v13, 0 }
 0x323   :  { %621 = vmatpush.bf16.msrb.mxu3 %v612_v14  ;;  %v418_v14 = vadd.f32 %v1372_v12, %v1385_v17 }
 0x326   :  { %895 = vmatmul.msk.bf16.vlgmr.msrb.gmra.mxu2 %vm252_vm1, %v558_v10 }
 0x329   :  { %v699_v30 = vpop.permute.xlu1 %698 }
 0x32a   :  { %v704_v34 = vsel %vm252_vm1, %v699_v30, 0 }
 0x331   :  { %v463_v15 = vpop.f32.mrf.mxu1 }
 0x339   :  { %v465_v18 = vpop.f32.mrf.mxu1 }
 0x341   :  { %v553_v19 = vpop.f32.mrf.mxu1 }
 0x342   :  { %v1426_v20 = vadd.f32 %v553_v19, %v1355_v55 }
 0x344   :  { %v582_v21 = vsel %vm252_vm1, %v1426_v20, -inf  ;;  %v580_v7 = vadd.f32 %v1426_v20, %v417_v31 }
 0x345   :  { %583 = vmax.xlane.f32.xlu0 %v582_v21 }
 0x349   :  { %v555_v22 = vpop.f32.mrf.mxu1 }
 0x359   :  { %627 = vrot.lane.b32.xlu0 %v1402_v52, %s1226_s23 }
 0x388   :  { %v352_v27 = vpop.f32.mrf.mxu2 }
 0x389   :  { %v358_v28 = vpack.c.bf16 %v352_v27, %v333_v59 }
 0x38b   :  { %893 = vmatmul.msk.bf16.vlgmr.msrb.gmra.mxu0 %vm252_vm1, %v358_v28 }
 0x390   :  { %v354_v29 = vpop.f32.mrf.mxu2 }
 0x399   :  { %v487_v32 = vpop.f32.mrf.mxu2 }
 0x39a   :  { %v493_v33 = vpack.c.bf16 %v487_v32, %v463_v15 }
 0x39c   :  { %892 = vmatmul.msk.bf16.vlgmr.msra.gmra.mxu3 %vm252_vm1, %v493_v33 }
 0x39d   :  { %713 = vmatpush.bf16.xpose.msra.mxu3 %v704_v34 }
 0x3a1   :  { %v489_v36 = vpop.f32.mrf.mxu2 }
 0x3a9   :  { %v576_v38 = vpop.f32.mrf.mxu2 }
 0x3aa   :  { %v577_v47 = vadd.f32 %v576_v38, %v1369_v11  ;;  %v648_v38 = vld [vmem:[#allocation14 + $0x10] sm:$0xff] }
 0x3ac   :  { %v585_v48 = vsel %vm252_vm1, %v577_v47, -inf  ;;  %v581_v0 = vadd.f32 %v577_v47, %v418_v14 }
 0x3b1   :  { %v578_v39 = vpop.f32.mrf.mxu2 }
 0x3b2   :  { %v649_v39 = vpack.c.bf16 %v648_v38, %v648_v38 }
 0x3b8   :  { %v584_v40 = vpop.xlane.xlu0 %583 }
 0x3b9   :  { %v588_v41 = vsub.f32 %v1426_v20, %v584_v40  ;;  %v655_v40 = vsel %vm320_vm4, %v649_v39, 0 }
 0x3ba   :  { %664 = vmatpush.bf16.msra.mxu1 %v655_v40 }
 0x3bb   :  { %v590_v42 = vmul.f32 1.442695, %v588_v41 }
 0x3bd   :  { %936 = vpow2.f32 %v590_v42 }
 0x3c3   :  { %v937_v43 = vpop.eup %936 }
 0x3c4   :  { %v594_v44 = vsel %vm252_vm1, %v937_v43, 0.0 }
 0x3c5   :  { %595 = vadd.xlane.f32.xlu2 %v594_v44 }
 0x3cb   :  { %v628_v45 = vpop.permute.xlu0 %627 }
 0x3cc   :  { %v633_v46 = vsel %vm320_vm4, %v628_v45, 0 }
 0x3cd   :  { %642 = vmatpush.bf16.msra.mxu0 %v633_v46 }
 0x3dd   :  { %675 = vrot.lane.b32.xlu2 %v1331_v25, %s1227_s24  ;;  %v674_v25 = vpop.permute.xlu1 %673 }
 0x3e5   :  { %v697_v61 = vpop.permute.xlu1 %696 }
 0x406   :  { %586 = vmax.xlane.f32.xlu2 %v585_v48 }
 0x408   :  { %v529_v49 = vpop.f32.mrf.mxu0 }
 0x410   :  { %v1471_v41 = vpop.f32.mrf.mxu0 }
 0x41f   :  { %v509_v50 = vpop.f32.mrf.mxu3 }
 0x420   :  { %v1443_v51 = vadd.f32 %v529_v49, %v509_v50 }
 0x427   :  { %v1450_v4 = vpop.f32.mrf.mxu3 }
 0x438   :  { %v596_v53 = vpop.xlane.xlu2 %595 }
 0x439   :  { %938 = vrcp.f32 %v596_v53 }
 0x43f   :  { %v939_v54 = vpop.eup %938 }
 0x440   :  { %v602_v56 = vmul.f32 %v939_v54, %v937_v43  ;;  %v676_v58 = vpop.permute.xlu2 %675 }
 0x441   :  { %v681_v59 = vsel %vm252_vm1, %v676_v58, 0 }
 0x442   :  { %v604_v60 = vpack.c.bf16 %v602_v56, %v602_v56  ;;  %690 = vmatpush.bf16.xpose.msra.mxu2 %v681_v59 }
 0x444   :  { %896 = vmatmul.msk.bf16.vlgmr.msrb.gmra.mxu3 %vm252_vm1, %v604_v60 }
 0x449   :  { %899 = vmatmul.msk.bf16.vlgmr.msra.gmra.mxu2 %vm252_vm1, %v674_v25 }
 0x454   :  { %900 = vmatmul.msk.bf16.vlgmr.msra.gmra.mxu3 %vm252_vm1, %v697_v61 }
 0x479   :  { %v587_v62 = vpop.xlane.xlu2 %586 }
 0x47a   :  { %v589_v63 = vsub.f32 %v577_v47, %v587_v62 }
 0x47c   :  { %v592_v1 = vmul.f32 1.442695, %v589_v63 }
 0x47e   :  { %940 = vpow2.f32 %v592_v1 }
 0x484   :  { %v941_v2 = vpop.eup %940 }
 0x485   :  { %v597_v3 = vsel %vm252_vm1, %v941_v2, 0.0 }
 0x486   :  { %598 = vadd.xlane.f32.xlu1 %v597_v3 }
 0x4c7   :  { %v623_v35 = vpop.f32.mrf.mxu3 }
 0x4cc   :  { %v692_v5 = vpop.f32.mrf.mxu2 }
 0x4cd   :  { %v693_v6 = vadd.f32 %v692_v5, %v1355_v55 }
 0x4cf   :  { %v625_v37 = vpop.f32.mrf.mxu3  ;;  %v721_v8 = vsel %vm252_vm1, %v693_v6, -inf  ;;  %v719_v9 = vadd.f32 %v693_v6, %v580_v7 }
 0x4d0   :  { %722 = vmax.xlane.f32.xlu0 %v721_v8 }
 0x4d1   :  { %v814_v10 = vmul.f32 0.25, %v719_v9 }
 0x4d3   :  { %v816_v18 = vsel %vm252_vm1, %v814_v10, -inf }
 0x4d4   :  { %v694_v13 = vpop.f32.mrf.mxu2 }
 0x4d5   :  { %v787_v13 = vld [vmem:[#allocation14 + $0x18] sm:$0xff] }
 0x4d6   :  { %v788_v14 = vpack.c.bf16 %v787_v13, %v787_v13 }
 0x4d7   :  { %v715_v15 = vpop.f32.mrf.mxu3 }
 0x4d8   :  { %v716_v57 = vadd.f32 %v715_v15, %v1369_v11  ;;  %817 = vmax.xlane.f32.xlu0 %v816_v18  ;;  %v794_v15 = vsel %vm320_vm4, %v788_v14, 0 }
 0x4d9   :  { %803 = vmatpush.bf16.msrb.mxu2 %v794_v15 }
 0x4da   :  { %v724_v55 = vsel %vm252_vm1, %v716_v57, -inf  ;;  %v720_v19 = vadd.f32 %v716_v57, %v581_v0 }
 0x4db   :  { %725 = vmax.xlane.f32.xlu2 %v724_v55 }
 0x4dc   :  { %v815_v20 = vmul.f32 0.25, %v720_v19 }
 0x4de   :  { %v819_v21 = vsel %vm252_vm1, %v815_v20, -inf }
 0x4df   :  { %v717_v22 = vpop.f32.mrf.mxu3 }
 0x4e0   :  { %820 = vmax.xlane.f32.xlu0 %v819_v21  ;;  %v532_v22 = vadd.f32 %v1471_v41, %v1450_v4 }
 0x4f9   :  { %v599_v23 = vpop.xlane.xlu1 %598 }
 0x4fa   :  { %942 = vrcp.f32 %v599_v23 }
 0x500   :  { %v943_v24 = vpop.eup %942 }
 0x501   :  { %v603_v12 = vmul.f32 %v943_v24, %v941_v2 }
 0x503   :  { %v605_v17 = vpack.c.bf16 %v603_v12, %v603_v12 }
 0x505   :  { %897 = vmatmul.msk.bf16.vlgmr.msra.gmra.mxu0 %vm252_vm1, %v605_v17 }
 0x543   :  { %v723_v26 = vpop.xlane.xlu0 %722 }
 0x544   :  { %v727_v11 = vsub.f32 %v693_v6, %v723_v26 }
 0x546   :  { %v729_v27 = vmul.f32 1.442695, %v727_v11 }
 0x548   :  { %944 = vpow2.f32 %v729_v27 }
 0x54b   :  { %v818_v42 = vpop.xlane.xlu0 %817 }
 0x54c   :  { %v822_v43 = vsub.f32 %v814_v10, %v818_v42 }
 0x54e   :  { %v945_v28 = vpop.eup %944  ;;  %v726_v29 = vpop.xlane.xlu2 %725  ;;  %v824_v46 = vmul.f32 1.442695, %v822_v43 }
 0x54f   :  { %v728_v30 = vsub.f32 %v716_v57, %v726_v29  ;;  %v733_v32 = vsel %vm252_vm1, %v945_v28, 0.0 }
 0x550   :  { %734 = vadd.xlane.f32.xlu1 %v733_v32 }
 0x551   :  { %v731_v33 = vmul.f32 1.442695, %v728_v30 }
 0x553   :  { %946 = vpow2.f32 %v731_v33  ;;  %v821_v47 = vpop.xlane.xlu0 %820 }
 0x554   :  { %948 = vpow2.f32 %v824_v46  ;;  %v823_v48 = vsub.f32 %v815_v20, %v821_v47 }
 0x556   :  { %v826_v50 = vmul.f32 1.442695, %v823_v48 }
 0x558   :  { %950 = vpow2.f32 %v826_v50 }
 0x559   :  { %v947_v34 = vpop.eup %946 }
 0x55a   :  { %v736_v36 = vsel %vm252_vm1, %v947_v34, 0.0  ;;  %v949_v53 = vpop.eup %948 }
 0x55b   :  { %737 = vadd.xlane.f32.xlu2 %v736_v36 }
 0x569   :  { %745 = vrot.lane.b32.xlu1 %v1376_v16, %s1227_s24  ;;  %v828_v16 = vsel %vm252_vm1, %v949_v53, 0.0 }
 0x573   :  { %766 = vrot.lane.b32.xlu2 %v1402_v52, %s1227_s24  ;;  %v951_v52 = vpop.eup %950 }
 0x574   :  { %v831_v54 = vsel %vm252_vm1, %v951_v52, 0.0 }
 0x582   :  { %v644_v44 = vpop.f32.mrf.mxu0 }
 0x583   :  { %v650_v45 = vpack.c.bf16 %v644_v44, %v623_v35 }
 0x585   :  { %898 = vmatmul.msk.bf16.vlgmr.msra.gmra.mxu1 %vm252_vm1, %v650_v45 }
 0x58a   :  { %v646_v49 = vpop.f32.mrf.mxu0 }
 0x593   :  { %829 = vadd.xlane.f32.xlu1 %v828_v16 }
 0x59c   :  { %832 = vadd.xlane.f32.xlu2 %v831_v54 }
 0x5c3   :  { %v735_v56 = vpop.xlane.xlu1 %734 }
 0x5ce   :  { %v738_v58 = vpop.xlane.xlu2 %737 }
 0x5cf   :  { %952 = vrcp.f32 %v738_v58 }
 0x5d0   :  { %954 = vrcp.f32 %v735_v56 }
 0x5d5   :  { %v953_v59 = vpop.eup %952 }
 0x5d6   :  { %v742_v60 = vmul.f32 %v953_v59, %v947_v34  ;;  %v767_v25 = vpop.permute.xlu2 %766  ;;  %v955_v61 = vpop.eup %954 }
 0x5d7   :  { %v772_v62 = vsel %vm320_vm4, %v767_v25, 0  ;;  %v741_v1 = vmul.f32 %v955_v61, %v945_v28 }
 0x5d8   :  { %v744_v63 = vpack.c.bf16 %v742_v60, %v742_v60  ;;  %781 = vmatpush.bf16.msrb.mxu1 %v772_v62 }
 0x5d9   :  { %v743_v35 = vpack.c.bf16 %v741_v1, %v741_v1 }
 0x5db   :  { %v746_v2 = vpop.permute.xlu1 %745  ;;  %902 = vmatmul.msk.bf16.vlgmr.msrb.gmra.mxu1 %vm252_vm1, %v744_v63 }
 0x5dc   :  { %v751_v3 = vsel %vm320_vm4, %v746_v2, 0 }
 0x5dd   :  { %760 = vmatpush.bf16.msrb.mxu0 %v751_v3 }
 0x5e0   :  { %901 = vmatmul.msk.bf16.vlgmr.msrb.gmra.mxu0 %vm252_vm1, %v743_v35 }
 0x602   :  { %v666_v31 = vpop.f32.mrf.mxu1 }
 0x603   :  { %v671_v5 = vadd.f32 %v666_v31, %v1443_v51 }
 0x606   :  { %v830_v6 = vpop.xlane.xlu1 %829 }
 0x607   :  { %956 = vrcp.f32 %v830_v6 }
 0x60a   :  { %v668_v18 = vpop.f32.mrf.mxu1 }
 0x60b   :  { %v672_v23 = vadd.f32 %v668_v18, %v532_v22 }
 0x60d   :  { %v957_v7 = vpop.eup %956 }
 0x60e   :  { %v836_v37 = vmul.f32 %v957_v7, %v949_v53 }
 0x60f   :  { %v833_v8 = vpop.xlane.xlu2 %832 }
 0x610   :  { %838 = vst.msk [vmem:[#allocation17] sm:$0xff] %vm252_vm1, %v836_v37  ;;  %958 = vrcp.f32 %v833_v8 }
 0x616   :  { %v959_v9 = vpop.eup %958 }
 0x617   :  { %v837_v10 = vmul.f32 %v959_v9, %v951_v52 }
 0x619   :  { %839 = vst.msk [vmem:[#allocation17 + $0x8] sm:$0xff] %vm252_vm1, %v837_v10 }
 0x61a   :  { %865 = dma.vmem_to_hbm [thread:$0]  %s858_s26, 256, %s860_s28, [#allocation18], %s1215_s17, %s1215_s17, %s1216_s18  }
 0x658   :  { %v783_v57 = vpop.f32.mrf.mxu1 }
 0x65d   :  { %v762_v51 = vpop.f32.mrf.mxu0 }
 0x65e   :  { %v789_v0 = vpack.c.bf16 %v783_v57, %v762_v51 }
 0x660   :  { %v785_v55 = vpop.f32.mrf.mxu1  ;;  %903 = vmatmul.msk.bf16.vlgmr.msrb.gmra.mxu2 %vm252_vm1, %v789_v0 }
 0x665   :  { %v764_v19 = vpop.f32.mrf.mxu0 }
 0x6e3   :  { %v805_v20 = vpop.f32.mrf.mxu2 }
 0x6e4   :  { %v810_v21 = vadd.f32 %v805_v20, %v671_v5 }
 0x6e6   :  { %812 = vst.msk [vmem:[#allocation16] sm:$0xff] %vm174_vm0, %v810_v21 }
 0x6eb   :  { %v807_v24 = vpop.f32.mrf.mxu2 }
 0x6ec   :  { %v811_v12 = vadd.f32 %v807_v24, %v672_v23 }
 0x6ee   :  { %813 = vst.msk [vmem:[#allocation16 + $0x8] sm:$0xff] %vm174_vm0, %v811_v12 }
 0x6ef   :  { %852 = dma.vmem_to_hbm [thread:$0]  %s845_s30, 256, %s847_s11, [#allocation4], %s1215_s17, %s1215_s17, %s1216_s18  }
 0x6f0   :  { %1210 = dma.done.wait [#allocation4], 256  }
 0x6f1   :  { %1211 = vsyncadd [#allocation4], 4294967040 }
 0x6f2   :  { %1212 = dma.done.wait [#allocation18], 256  }
 0x6f3   :  { %1213 = vsyncadd [#allocation18], 4294967040 }
 0x6f4   :  { %874 = vsyncpa [#allocation3], 1 }
 0x6f5   :  { %875 = vsyncpa [#allocation6], 1 }
 0x6f6   :  { %876 = vsyncpa [#allocation9], 1 }
 0x6f7   :  { %877 = vsyncpa [#allocation12], 1 }
 0x6f8   :  { %878 = vsyncpa [#allocation15], 1 }
 0x6f9   :  { %879 = vsyncpa [#allocation4], 1 }
 0x6fa   :  { %880 = vsyncpa [#allocation18], 1 }

</bundles_post_ra>
